<compile_context>
chip_gen: v6e
topology: v6e:2x2x1
jax: 0.10.0
libtpu: 0.0.40
codegen_flags: <defaults>
</compile_context>

<pallas_src>
import numpy as np
import jax
import jax.numpy as jnp
from jax.experimental import pallas as pl
from jax.experimental.pallas import tpu as pltpu


# ----------------------------------------------------------------------------
# Kernel
# ----------------------------------------------------------------------------
def _make_kernel(n_extra, w0, s0, compute_dtype):
    """Fused VaR|CVaR forward kernel (batch on the 128-lane axis)."""
    inv_w0 = 1.0 / float(w0)
    inv_s0 = 1.0 / float(s0)

    def silu(z):                     # f32 elementwise (VPU mul + EUP sigmoid)
        return z * jax.nn.sigmoid(z)

    def mm(w, y):                    # bf16 (or f32) MXU inputs, f32 accumulate
        return jnp.dot(w, y.astype(compute_dtype),
                       preferred_element_type=jnp.float32)

    def kernel(state_ref, action_ref, w1_ref, w3a_ref, wsq_ref, wo_ref,
               b_ref, bo_ref, out_ref):
        # --- normalize_states; rows = state features, lanes = batch ---------
        x = state_ref[...].astype(jnp.float32)
        r = jax.lax.broadcasted_iota(jnp.int32, x.shape, 0)
        # log is evaluated on rows 0/1 too, but its (possibly NaN) value is
        # discarded by the select -- same forward semantics as the torch code.
        x_norm = jnp.where(r == 0, x,
                           jnp.where(r == 1, x * inv_w0 - 1.0,
                                     jnp.log(x * inv_s0)))
        act = action_ref[...]

        # --- fused trunk: rows [0,H) = VaR branch, rows [H,2H) = CVaR -------
        y = silu(mm(w1_ref[...], x_norm) + b_ref[0])               # h1
        y = silu(mm(wsq_ref[0], y) + b_ref[1])                     # h2
        # h3(cat(y, action)) == W3_hidden @ y + W3_action @ action + b3
        y = silu(mm(wsq_ref[1], y) + mm(w3a_ref[...], act) + b_ref[2])
        for i in range(n_extra):                                    # h_n
            y = silu(mm(wsq_ref[2 + i], y) + b_ref[3 + i])
        z = mm(wo_ref[...], y) + bo_ref[...]                        # (2, tb)

        var = 8.0 * jnp.tanh(z[0:1, :])
        cvar = jnp.clip(z[1:2, :], 0.0, 5.0) + var                  # Excess+VaR
        out_ref[...] = jnp.concatenate([var, cvar], axis=0)         # one store

    return kernel


# ----------------------------------------------------------------------------
# Host-side parameter packing (branch fusion via block-diagonal weights)
# ----------------------------------------------------------------------------
def _pack_fused_params(var_p, cvar_p, hidden, n_extra, compute_dtype):
    H = hidden

    def split(p):
        W1, b1, W2, b2, W3, b3 = p[:6]
        rest = p[6:]
        Wn = [rest[2 * i] for i in range(n_extra)]
        bn = [rest[2 * i + 1] for i in range(n_extra)]
        Wo, bo = rest[2 * n_extra], rest[2 * n_extra + 1]
        return W1, b1, W2, b2, W3[:, :H], W3[:, H:], b3, Wn, bn, Wo, bo

    (W1v, b1v, W2v, b2v, W3hv, W3av, b3v, Wnv, bnv, Wov, bov) = split(var_p)
    (W1c, b1c, W2c, b2c, W3hc, W3ac, b3c, Wnc, bnc, Woc, boc) = split(cvar_p)

    def bd(a, b):  # block-diagonal stack, torch (out, in) layout
        za = jnp.zeros((a.shape[0], b.shape[1]), jnp.float32)
        zb = jnp.zeros((b.shape[0], a.shape[1]), jnp.float32)
        return jnp.concatenate(
            [jnp.concatenate([a, za], axis=1),
             jnp.concatenate([zb, b], axis=1)], axis=0)

    cat0 = lambda a, b: jnp.concatenate([a, b], axis=0)

    w1 = cat0(W1v, W1c)                                       # (2H, s_size)
    w3a = cat0(W3av, W3ac)                                     # (2H, a_size)
    wsq = jnp.stack([bd(W2v, W2c), bd(W3hv, W3hc)]
                    + [bd(a, b) for a, b in zip(Wnv, Wnc)])    # (2+n, 2H, 2H)
    wo = bd(Wov, Woc)                                          # (2, 2H)
    b_stack = jnp.stack([cat0(b1v, b1c), cat0(b2v, b2c), cat0(b3v, b3c)]
                        + [cat0(a, b) for a, b in zip(bnv, bnc)])[..., None]
    bo = cat0(bov, boc)[:, None]                               # (2, 1)

    return (w1.astype(compute_dtype), w3a.astype(compute_dtype),
            wsq.astype(compute_dtype), wo.astype(compute_dtype),
            b_stack.astype(jnp.float32), bo.astype(jnp.float32))


# ----------------------------------------------------------------------------
# Wrapper
# ----------------------------------------------------------------------------
def qcvar_forward(state, action, var_params, cvar_params, *, w0, s0,
                  tile_b=None, use_bf16=True):
    """Fused QCVaRANN forward.

    state  : (B, s_size) f32          action : (B, a_size) f32
    var_params / cvar_params: torch-layout per-branch parameter lists
      [W1 (H,s), b1 (H,), W2 (H,H), b2 (H,), W3 (H,H+a), b3 (H,),
       (Wn (H,H), bn (H,)) * n_extra, Wo (1,H), bo (1,)]
    Returns (VaR, CVaR), each (B, 1) float32.
    """
    B, s_size = state.shape
    _, a_size = action.shape
    hidden = var_params[0].shape[0]
    n_extra = (len(var_params) - 8) // 2
    compute_dtype = jnp.bfloat16 if use_bf16 else jnp.float32

    if tile_b is None:
        # big tiles amortize per-grid-step overhead; keep >=2 steps if we can
        # so v7x's two TensorCores both get work on the "parallel" axis.
        for cand in (1024, 512, 256, 128):
            if B % cand == 0 and B // cand >= 2:
                tile_b = cand
                break
        else:
            tile_b = B
    assert B % tile_b == 0
    assert tile_b % 128 == 0 or tile_b == B, (
        "batch maps to the 128-lane axis: tile_b must be a multiple of 128 "
        "or the full batch")

    packed = _pack_fused_params(var_params, cvar_params, hidden, n_extra,
                                compute_dtype)

    state_t = state.T     # (s_size, B) -- batch on lanes
    action_t = action.T   # (a_size, B)

    def full_block(arr):  # whole (tiny) weight array resident every step
        zeros = (0,) * arr.ndim
        return pl.BlockSpec(arr.shape, lambda i, z=zeros: z)

    in_specs = [pl.BlockSpec((s_size, tile_b), lambda i: (0, i)),
                pl.BlockSpec((a_size, tile_b), lambda i: (0, i))]
    in_specs += [full_block(p) for p in packed]
    out_spec = pl.BlockSpec((2, tile_b), lambda i: (0, i))    # lane-dense slab

    kernel = _make_kernel(n_extra, float(w0), float(s0), compute_dtype)
    out = pl.pallas_call(
        kernel,
        grid=(B // tile_b,),
        in_specs=in_specs,
        out_specs=out_spec,
        out_shape=jax.ShapeDtypeStruct((2, B), jnp.float32),
        compiler_params=pltpu.CompilerParams(
            dimension_semantics=("parallel",)),
    )(state_t, action_t, *packed)

    var = out[0:1, :].T     # (B, 1)
    cvar = out[1:2, :].T    # (B, 1)
    return var, cvar


# ----------------------------------------------------------------------------
# Deterministic parameter init (Xavier-uniform weights, torch (out,in) layout)
# ----------------------------------------------------------------------------
def _xavier(key, fan_out, fan_in):
    bound = np.sqrt(6.0 / (fan_in + fan_out))
    return jax.random.uniform(key, (fan_out, fan_in), jnp.float32, -bound, bound)


def make_branch_params(key, s_size, a_size, hidden, n_extra):
    # The torch module zero-inits biases; we use small random biases here so
    # the test actually exercises the bias path of the kernel.
    n_lin = 4 + n_extra
    keys = jax.random.split(key, 2 * n_lin)
    bias = lambda k, n: jax.random.uniform(k, (n,), jnp.float32, -0.1, 0.1)
    p = [_xavier(keys[0], hidden, s_size), bias(keys[1], hidden),
         _xavier(keys[2], hidden, hidden), bias(keys[3], hidden),
         _xavier(keys[4], hidden, hidden + a_size), bias(keys[5], hidden)]
    for i in range(n_extra):
        p += [_xavier(keys[6 + 2 * i], hidden, hidden),
              bias(keys[7 + 2 * i], hidden)]
    p += [_xavier(keys[6 + 2 * n_extra], 1, hidden),
          bias(keys[7 + 2 * n_extra], 1)]
    return p


# ----------------------------------------------------------------------------
# Pure-JAX reference (mirrors the torch forward exactly, f32)
# ----------------------------------------------------------------------------
def _reference(state, action, var_params, cvar_params, w0, s0):
    n_extra = (len(var_params) - 8) // 2
    x = jnp.concatenate([state[:, 0:1],
                         state[:, 1:2] / w0 - 1.0,
                         jnp.log(state[:, 2:] / s0)], axis=-1)
    silu = lambda z: z * jax.nn.sigmoid(z)

    def branch(p):
        W1, b1, W2, b2, W3, b3 = p[:6]
        rest = p[6:]
        y = silu(x @ W1.T + b1)
        y = silu(y @ W2.T + b2)
        y = silu(jnp.concatenate([y, action], axis=-1) @ W3.T + b3)
        for i in range(n_extra):
            y = silu(y @ rest[2 * i].T + rest[2 * i + 1])
        return y @ rest[2 * n_extra].T + rest[2 * n_extra + 1]

    var = 8.0 * jnp.tanh(branch(var_params))
    excess = jnp.clip(branch(cvar_params), 0.0, 5.0)
    return var, excess + var


# ----------------------------------------------------------------------------
if __name__ == "__main__":
    # hidden_Q=32, layers_Q=4 (-> one extra hidden layer), s_size=4, a_size=2.
    B, S_SIZE, A_SIZE, HIDDEN, N_LAYERS = 256, 4, 2, 32, 4
    N_EXTRA = N_LAYERS - 3
    W0, S0 = 1.0, 100.0          # env.w0 / env.S0 stand-ins

    key = jax.random.PRNGKey(0)
    k_state, k_action, k_var, k_cvar = jax.random.split(key, 4)

    raw = jax.random.uniform(k_state, (B, S_SIZE), jnp.float32, 0.5, 1.5)
    state = raw.at[:, 2:].multiply(S0)      # cols >= 2 positive (log is taken)
    action = jax.random.uniform(k_action, (B, A_SIZE), jnp.float32, -1.0, 1.0)

    var_params = make_branch_params(k_var, S_SIZE, A_SIZE, HIDDEN, N_EXTRA)
    cvar_params = make_branch_params(k_cvar, S_SIZE, A_SIZE, HIDDEN, N_EXTRA)

    ref_var, ref_cvar = _reference(state, action, var_params, cvar_params,
                                   W0, S0)

    # Exact-semantics check: f32 MXU inputs, tight tolerance.
    v32, c32 = qcvar_forward(state, action, var_params, cvar_params,
                             w0=W0, s0=S0, use_bf16=False)
    jax.block_until_ready((v32, c32))
    np.testing.assert_allclose(np.asarray(v32), np.asarray(ref_var),
                               rtol=1e-3, atol=1e-3)
    np.testing.assert_allclose(np.asarray(c32), np.asarray(ref_cvar),
                               rtol=1e-3, atol=1e-3)

    # Performance path: bf16 MXU inputs (f32 accumulate) -> looser tolerance.
    var, cvar = qcvar_forward(state, action, var_params, cvar_params,
                              w0=W0, s0=S0, use_bf16=True)
    jax.block_until_ready((var, cvar))
    np.testing.assert_allclose(np.asarray(var), np.asarray(ref_var),
                               rtol=5e-2, atol=1e-1)
    np.testing.assert_allclose(np.asarray(cvar), np.asarray(ref_cvar),
                               rtol=5e-2, atol=1e-1)
    assert var.shape == (B, 1) and cvar.shape == (B, 1)

    print("KERNEL_OK")
</pallas_src>

<mosaic_0001>
module attributes {stable_mosaic.version = 11 : i64} {
  func.func @kernel(%arg0: i32, %arg1: memref<4x128xf32, #tpu.memory_space<vmem>>, %arg2: memref<2x128xf32, #tpu.memory_space<vmem>>, %arg3: memref<64x4xf32, #tpu.memory_space<vmem>>, %arg4: memref<64x2xf32, #tpu.memory_space<vmem>>, %arg5: memref<3x64x64xf32, #tpu.memory_space<vmem>>, %arg6: memref<2x64xf32, #tpu.memory_space<vmem>>, %arg7: memref<4x64x1xf32, #tpu.memory_space<vmem>>, %arg8: memref<2x1xf32, #tpu.memory_space<vmem>>, %arg9: memref<2x128xf32, #tpu.memory_space<vmem>>) attributes {dimension_semantics = [#tpu.dimension_semantics<parallel>], iteration_bounds = array<i64: 2>, scalar_prefetch = 0 : i64, scratch_operands = 0 : i64, tpu.core_type = #tpu.core_type<tc>, window_params = [{transform_indices = @transform_0, window_bounds = array<i64: 4, 128>}, {transform_indices = @transform_1, window_bounds = array<i64: 2, 128>}, {pipeline_mode = #tpu.pipeline_mode<synchronous>, transform_indices = @transform_2, window_bounds = array<i64: 64, 4>}, {pipeline_mode = #tpu.pipeline_mode<synchronous>, transform_indices = @transform_3, window_bounds = array<i64: 64, 2>}, {pipeline_mode = #tpu.pipeline_mode<synchronous>, transform_indices = @transform_4, window_bounds = array<i64: 3, 64, 64>}, {pipeline_mode = #tpu.pipeline_mode<synchronous>, transform_indices = @transform_5, window_bounds = array<i64: 2, 64>}, {pipeline_mode = #tpu.pipeline_mode<synchronous>, transform_indices = @transform_6, window_bounds = array<i64: 4, 64, 1>}, {pipeline_mode = #tpu.pipeline_mode<synchronous>, transform_indices = @transform_7, window_bounds = array<i64: 2, 1>}, {transform_indices = @transform_8, window_bounds = array<i64: 2, 128>}]} {
    %c0 = arith.constant 0 : index
    %c0_0 = arith.constant 0 : index
    %0 = vector.load %arg1[%c0, %c0_0] : memref<4x128xf32, #tpu.memory_space<vmem>>, vector<4x128xf32>
    %1 = tpu.iota {dimensions = array<i32: 0>} : vector<4x128xi32>
    %c0_i32 = arith.constant 0 : i32
    %2 = vector.broadcast %c0_i32 : i32 to vector<4x128xi32>
    %3 = arith.cmpi eq, %1, %2 : vector<4x128xi32>
    %c1_i32 = arith.constant 1 : i32
    %4 = vector.broadcast %c1_i32 : i32 to vector<4x128xi32>
    %5 = arith.cmpi eq, %1, %4 : vector<4x128xi32>
    %cst = arith.constant 1.000000e+00 : f32
    %6 = vector.broadcast %cst : f32 to vector<4x128xf32>
    %7 = arith.mulf %0, %6 : vector<4x128xf32>
    %cst_1 = arith.constant 1.000000e+00 : f32
    %8 = vector.broadcast %cst_1 : f32 to vector<4x128xf32>
    %9 = arith.subf %7, %8 : vector<4x128xf32>
    %cst_2 = arith.constant 0.00999999977 : f32
    %10 = vector.broadcast %cst_2 : f32 to vector<4x128xf32>
    %11 = arith.mulf %0, %10 : vector<4x128xf32>
    %12 = math.log %11 : vector<4x128xf32>
    %13 = arith.select %5, %9, %12 : vector<4x128xi1>, vector<4x128xf32>
    %14 = arith.select %3, %0, %13 : vector<4x128xi1>, vector<4x128xf32>
    %c0_3 = arith.constant 0 : index
    %c0_4 = arith.constant 0 : index
    %15 = vector.load %arg2[%c0_3, %c0_4] : memref<2x128xf32, #tpu.memory_space<vmem>>, vector<2x128xf32>
    %c0_5 = arith.constant 0 : index
    %c0_6 = arith.constant 0 : index
    %16 = vector.load %arg3[%c0_5, %c0_6] : memref<64x4xf32, #tpu.memory_space<vmem>>, vector<64x4xf32>
    %cst_7 = arith.constant dense<0.000000e+00> : vector<64x128xf32>
    %17 = tpu.matmul %16, %14, %cst_7 {dimension_numbers = #tpu.dot_dimension_numbers<[1], [0], [0], [1], [0, 0, 1, 1], [], []>} : vector<64x4xf32>, vector<4x128xf32>, vector<64x128xf32> -> vector<64x128xf32>
    %c0_8 = arith.constant 0 : index
    %c0_9 = arith.constant 0 : index
    %c0_10 = arith.constant 0 : index
    %18 = vector.load %arg7[%c0_8, %c0_9, %c0_10] : memref<4x64x1xf32, #tpu.memory_space<vmem>>, vector<1x64x1xf32>
    %19 = vector.shape_cast %18 : vector<1x64x1xf32> to vector<64x1xf32>
    %20 = vector.broadcast %19 : vector<64x1xf32> to vector<64x128xf32>
    %21 = arith.addf %17, %20 : vector<64x128xf32>
    %22 = arith.negf %21 : vector<64x128xf32>
    %23 = math.exp %22 : vector<64x128xf32>
    %cst_11 = arith.constant 1.000000e+00 : f32
    %24 = vector.broadcast %cst_11 : f32 to vector<64x128xf32>
    %25 = arith.addf %24, %23 : vector<64x128xf32>
    %26 = arith.divf %24, %25 : vector<64x128xf32>
    %27 = arith.mulf %21, %26 : vector<64x128xf32>
    %c0_12 = arith.constant 0 : index
    %c0_13 = arith.constant 0 : index
    %c0_14 = arith.constant 0 : index
    %28 = vector.load %arg5[%c0_12, %c0_13, %c0_14] : memref<3x64x64xf32, #tpu.memory_space<vmem>>, vector<1x64x64xf32>
    %29 = vector.shape_cast %28 : vector<1x64x64xf32> to vector<64x64xf32>
    %cst_15 = arith.constant dense<0.000000e+00> : vector<64x128xf32>
    %30 = tpu.matmul %29, %27, %cst_15 {dimension_numbers = #tpu.dot_dimension_numbers<[1], [0], [0], [1], [0, 0, 1, 1], [], []>} : vector<64x64xf32>, vector<64x128xf32>, vector<64x128xf32> -> vector<64x128xf32>
    %c1 = arith.constant 1 : index
    %c0_16 = arith.constant 0 : index
    %c0_17 = arith.constant 0 : index
    %31 = vector.load %arg7[%c1, %c0_16, %c0_17] : memref<4x64x1xf32, #tpu.memory_space<vmem>>, vector<1x64x1xf32>
    %32 = vector.shape_cast %31 : vector<1x64x1xf32> to vector<64x1xf32>
    %33 = vector.broadcast %32 : vector<64x1xf32> to vector<64x128xf32>
    %34 = arith.addf %30, %33 : vector<64x128xf32>
    %35 = arith.negf %34 : vector<64x128xf32>
    %36 = math.exp %35 : vector<64x128xf32>
    %cst_18 = arith.constant 1.000000e+00 : f32
    %37 = vector.broadcast %cst_18 : f32 to vector<64x128xf32>
    %38 = arith.addf %37, %36 : vector<64x128xf32>
    %39 = arith.divf %37, %38 : vector<64x128xf32>
    %40 = arith.mulf %34, %39 : vector<64x128xf32>
    %c1_19 = arith.constant 1 : index
    %c0_20 = arith.constant 0 : index
    %c0_21 = arith.constant 0 : index
    %41 = vector.load %arg5[%c1_19, %c0_20, %c0_21] : memref<3x64x64xf32, #tpu.memory_space<vmem>>, vector<1x64x64xf32>
    %42 = vector.shape_cast %41 : vector<1x64x64xf32> to vector<64x64xf32>
    %cst_22 = arith.constant dense<0.000000e+00> : vector<64x128xf32>
    %43 = tpu.matmul %42, %40, %cst_22 {dimension_numbers = #tpu.dot_dimension_numbers<[1], [0], [0], [1], [0, 0, 1, 1], [], []>} : vector<64x64xf32>, vector<64x128xf32>, vector<64x128xf32> -> vector<64x128xf32>
    %c0_23 = arith.constant 0 : index
    %c0_24 = arith.constant 0 : index
    %44 = vector.load %arg4[%c0_23, %c0_24] : memref<64x2xf32, #tpu.memory_space<vmem>>, vector<64x2xf32>
    %cst_25 = arith.constant dense<0.000000e+00> : vector<64x128xf32>
    %45 = tpu.matmul %44, %15, %cst_25 {dimension_numbers = #tpu.dot_dimension_numbers<[1], [0], [0], [1], [0, 0, 1, 1], [], []>} : vector<64x2xf32>, vector<2x128xf32>, vector<64x128xf32> -> vector<64x128xf32>
    %46 = arith.addf %43, %45 : vector<64x128xf32>
    %c2 = arith.constant 2 : index
    %c0_26 = arith.constant 0 : index
    %c0_27 = arith.constant 0 : index
    %47 = vector.load %arg7[%c2, %c0_26, %c0_27] : memref<4x64x1xf32, #tpu.memory_space<vmem>>, vector<1x64x1xf32>
    %48 = vector.shape_cast %47 : vector<1x64x1xf32> to vector<64x1xf32>
    %49 = vector.broadcast %48 : vector<64x1xf32> to vector<64x128xf32>
    %50 = arith.addf %46, %49 : vector<64x128xf32>
    %51 = arith.negf %50 : vector<64x128xf32>
    %52 = math.exp %51 : vector<64x128xf32>
    %cst_28 = arith.constant 1.000000e+00 : f32
    %53 = vector.broadcast %cst_28 : f32 to vector<64x128xf32>
    %54 = arith.addf %53, %52 : vector<64x128xf32>
    %55 = arith.divf %53, %54 : vector<64x128xf32>
    %56 = arith.mulf %50, %55 : vector<64x128xf32>
    %c2_29 = arith.constant 2 : index
    %c0_30 = arith.constant 0 : index
    %c0_31 = arith.constant 0 : index
    %57 = vector.load %arg5[%c2_29, %c0_30, %c0_31] : memref<3x64x64xf32, #tpu.memory_space<vmem>>, vector<1x64x64xf32>
    %58 = vector.shape_cast %57 : vector<1x64x64xf32> to vector<64x64xf32>
    %cst_32 = arith.constant dense<0.000000e+00> : vector<64x128xf32>
    %59 = tpu.matmul %58, %56, %cst_32 {dimension_numbers = #tpu.dot_dimension_numbers<[1], [0], [0], [1], [0, 0, 1, 1], [], []>} : vector<64x64xf32>, vector<64x128xf32>, vector<64x128xf32> -> vector<64x128xf32>
    %c3 = arith.constant 3 : index
    %c0_33 = arith.constant 0 : index
    %c0_34 = arith.constant 0 : index
    %60 = vector.load %arg7[%c3, %c0_33, %c0_34] : memref<4x64x1xf32, #tpu.memory_space<vmem>>, vector<1x64x1xf32>
    %61 = vector.shape_cast %60 : vector<1x64x1xf32> to vector<64x1xf32>
    %62 = vector.broadcast %61 : vector<64x1xf32> to vector<64x128xf32>
    %63 = arith.addf %59, %62 : vector<64x128xf32>
    %64 = arith.negf %63 : vector<64x128xf32>
    %65 = math.exp %64 : vector<64x128xf32>
    %cst_35 = arith.constant 1.000000e+00 : f32
    %66 = vector.broadcast %cst_35 : f32 to vector<64x128xf32>
    %67 = arith.addf %66, %65 : vector<64x128xf32>
    %68 = arith.divf %66, %67 : vector<64x128xf32>
    %69 = arith.mulf %63, %68 : vector<64x128xf32>
    %c0_36 = arith.constant 0 : index
    %c0_37 = arith.constant 0 : index
    %70 = vector.load %arg6[%c0_36, %c0_37] : memref<2x64xf32, #tpu.memory_space<vmem>>, vector<2x64xf32>
    %cst_38 = arith.constant dense<0.000000e+00> : vector<2x128xf32>
    %71 = tpu.matmul %70, %69, %cst_38 {dimension_numbers = #tpu.dot_dimension_numbers<[1], [0], [0], [1], [0, 0, 1, 1], [], []>} : vector<2x64xf32>, vector<64x128xf32>, vector<2x128xf32> -> vector<2x128xf32>
    %c0_39 = arith.constant 0 : index
    %c0_40 = arith.constant 0 : index
    %72 = vector.load %arg8[%c0_39, %c0_40] : memref<2x1xf32, #tpu.memory_space<vmem>>, vector<2x1xf32>
    %73 = vector.broadcast %72 : vector<2x1xf32> to vector<2x128xf32>
    %74 = arith.addf %71, %73 : vector<2x128xf32>
    %75 = vector.extract_strided_slice %74 {offsets = [0, 0], sizes = [1, 128], strides = [1, 1]} : vector<2x128xf32> to vector<1x128xf32>
    %76 = math.tanh %75 : vector<1x128xf32>
    %cst_41 = arith.constant 8.000000e+00 : f32
    %77 = vector.broadcast %cst_41 : f32 to vector<1x128xf32>
    %78 = arith.mulf %77, %76 : vector<1x128xf32>
    %79 = vector.extract_strided_slice %74 {offsets = [1, 0], sizes = [1, 128], strides = [1, 1]} : vector<2x128xf32> to vector<1x128xf32>
    %cst_42 = arith.constant 0.000000e+00 : f32
    %cst_43 = arith.constant 5.000000e+00 : f32
    %80 = vector.broadcast %cst_42 : f32 to vector<1x128xf32>
    %81 = arith.maximumf %80, %79 : vector<1x128xf32>
    %82 = vector.broadcast %cst_43 : f32 to vector<1x128xf32>
    %83 = arith.minimumf %82, %81 : vector<1x128xf32>
    %84 = arith.addf %83, %78 : vector<1x128xf32>
    %85 = tpu.concatenate %78, %84 in 0 : vector<1x128xf32>, vector<1x128xf32> -> vector<2x128xf32>
    %c0_44 = arith.constant 0 : index
    %c0_45 = arith.constant 0 : index
    %86 = vector.load %arg9[%c0_44, %c0_45] : memref<2x128xf32, #tpu.memory_space<vmem>>, vector<2x128xf32>
    tpu.vector_store %arg9[%c0_44, %c0_45], %85 {strides = array<i32>} : memref<2x128xf32, #tpu.memory_space<vmem>>, vector<2x128xf32>,
    return
  }
  func.func @transform_0(%arg0: i32) -> (i32, i32) {
    %c0_i32 = arith.constant 0 : i32
    %c0_i32_0 = arith.constant 0 : i32
    return %c0_i32, %arg0 : i32, i32
  }
  func.func @transform_1(%arg0: i32) -> (i32, i32) {
    %c0_i32 = arith.constant 0 : i32
    %c0_i32_0 = arith.constant 0 : i32
    return %c0_i32, %arg0 : i32, i32
  }
  func.func @transform_2(%arg0: i32) -> (i32, i32) {
    %c0_i32 = arith.constant 0 : i32
    %c0_i32_0 = arith.constant 0 : i32
    %c0_i32_1 = arith.constant 0 : i32
    return %c0_i32, %c0_i32_0 : i32, i32
  }
  func.func @transform_3(%arg0: i32) -> (i32, i32) {
    %c0_i32 = arith.constant 0 : i32
    %c0_i32_0 = arith.constant 0 : i32
    %c0_i32_1 = arith.constant 0 : i32
    return %c0_i32, %c0_i32_0 : i32, i32
  }
  func.func @transform_4(%arg0: i32) -> (i32, i32, i32) {
    %c0_i32 = arith.constant 0 : i32
    %c0_i32_0 = arith.constant 0 : i32
    %c0_i32_1 = arith.constant 0 : i32
    %c0_i32_2 = arith.constant 0 : i32
    return %c0_i32, %c0_i32_0, %c0_i32_1 : i32, i32, i32
  }
  func.func @transform_5(%arg0: i32) -> (i32, i32) {
    %c0_i32 = arith.constant 0 : i32
    %c0_i32_0 = arith.constant 0 : i32
    %c0_i32_1 = arith.constant 0 : i32
    return %c0_i32, %c0_i32_0 : i32, i32
  }
  func.func @transform_6(%arg0: i32) -> (i32, i32, i32) {
    %c0_i32 = arith.constant 0 : i32
    %c0_i32_0 = arith.constant 0 : i32
    %c0_i32_1 = arith.constant 0 : i32
    %c0_i32_2 = arith.constant 0 : i32
    return %c0_i32, %c0_i32_0, %c0_i32_1 : i32, i32, i32
  }
  func.func @transform_7(%arg0: i32) -> (i32, i32) {
    %c0_i32 = arith.constant 0 : i32
    %c0_i32_0 = arith.constant 0 : i32
    %c0_i32_1 = arith.constant 0 : i32
    return %c0_i32, %c0_i32_0 : i32, i32
  }
  func.func @transform_8(%arg0: i32) -> (i32, i32) {
    %c0_i32 = arith.constant 0 : i32
    %c0_i32_0 = arith.constant 0 : i32
    return %c0_i32, %arg0 : i32, i32
  }
}

</mosaic_0001>

<bundles_post_ra>
// kernel: tpu_custom_call.1
= control target key start
LH: loop header
LB: loop body
LE: loop exit
PB: predicated region body
PF: predicated region fallthrough
CT: control target
= control target key end

     0   :  { %13 = vsyncpa [#allocation3], 0  ;;  %s2683_s0 = inlined_call_operand.vmem [shape: f32[4,256], index: 0, kind: input, shape index: {}]   ;;  %s2684_s1 = inlined_call_operand.vmem [shape: f32[2,256], index: 1, kind: input, shape index: {}]   ;;  %s2685_s2 = inlined_call_operand.vmem [shape: f32[64,4], index: 2, kind: input, shape index: {}]   ;;  %s2686_s3 = inlined_call_operand.vmem [shape: f32[64,2], index: 3, kind: input, shape index: {}]   ;;  %s2687_s4 = inlined_call_operand.vmem [shape: f32[3,64,64], index: 4, kind: input, shape index: {}]   ;;  %s2688_s5 = inlined_call_operand.vmem [shape: f32[2,64], index: 5, kind: input, shape index: {}]   ;;  %s2689_s6 = inlined_call_operand.vmem [shape: f32[4,64,1], index: 6, kind: input, shape index: {}]   ;;  %s2690_s7 = inlined_call_operand.vmem [shape: f32[2,1], index: 7, kind: input, shape index: {}]   ;;  %s2691_s8 = inlined_call_operand.hbm [shape: f32[2,256], index: 8, kind: output, shape index: {}]  }
   0x1   :  { %15 = vsyncpa [#allocation3 + $0x1], 0  ;;  %s2251_s27 = smov 0   ;;  %s2253_s28 = smov 0  }
   0x2   :  { %s2255_s29 = smov 0   ;;  %s2257_s30 = smov 0  }
   0x3 LB: > { %s2272_s9 = sadd.s32 4294967295, %s2200_s30   ;;  %s1631_s10 = sadd.s32 4294967294, %s2200_s30   ;;  %s2200_s30 = sphi %s2257_s30, %s2697_s30   ;;  %s2196_s29 = sphi %s2255_s29, %s2696_s29   ;;  %s2192_s28 = sphi %s2253_s28, %s2695_s28   ;;  %s2188_s27 = sphi %s2251_s27, %s2694_s27  }
   0x4   : > { %s2276_s11 = sadd.s32 1, %s2200_s30   ;;  %s206_s12 = sadd.s32 1, %s2196_s29 }
   0x5   : > { %s203_s13 = ssub.s32 %s2200_s30, %s2276_s11  ;;  %p216_p0 = scmp.ne.s32.totalorder %s2196_s29, %s2192_s28 }
   0x6   : > { %p204_p1 = scmp.eq.s32.totalorder %s203_s13, 0  ;;  %p217_p2 = scmp.eq.s32.totalorder %s2272_s9, 1 }
   0x7   : > { %p222_p3 = scmp.ne.s32.totalorder %s2192_s28, %s2188_s27  ;;  %p223_p4 = scmp.eq.s32.totalorder %s1631_s10, 1 }
   0x8   : > { %s2287_s14 = scalar_select %p204_p1, %s2196_s29, %s206_s12  }
   0x9   : > { %p2289_p5 = por %p217_p2, %p216_p0  ;;  %p2293_p6 = por %p223_p4, %p222_p3 }
   0xa   : > { %p1634_p7 = scmp.ge.s32.totalorder %s2200_s30, 1  ;;  %p273_p8 = scmp.lt.s32.totalorder %s2200_s30, 3 }
   0xc   : > { %p274_p9 = pnand %p1634_p7, %p273_p8 }
   0xd   : > { %p310_p10 = scmp.lt.s32.totalorder (!%p274_p9), %s2272_s9, 1  ;;  %s307_s26 = sand.u32 (!%p274_p9), 1, %s2192_s28  }
   0xe   : > { %277 = sbr.rel (%p274_p9) target bundleno = 1304 (0x518), region = 52  ;;  %s1755_s12 = sshll.u32 (!%p274_p9), %s2272_s9, 5 }
   0xf   : > { %s2648_s20 = scalar_lea.hbm (!%p274_p9), %s2691_s8, %s1755_s12  ;;  %s1547_s21 = scalar_lea.sflag (!%p274_p9), [#allocation3], %s307_s26 }
  0x10   : > { %s2205_s23 = smov (!%p274_p9), [#allocation2]  }
  0x13   : > { %v330_v0 = vld [vmem:[%s2685_s2] sm:$0xff]  ;;  %vm386_vm0 = vcmask 31744   ;;  %s2305_s19 = scalar_select %p310_p10, %s2272_s9, 1  ;;  %v2202_v1 = vmov 0   ;;  %v345_v2 = vld [vmem:[%s2689_s6 + $0x38] sm:$0xff]  ;;  %v343_v3 = vld [vmem:[%s2689_s6 + $0x28] sm:$0xff]  ;;  %v319_v12 = vlaneseq }
  0x14   : > { %1835 = vmatprep.mubr.msk.f32.mxu0 %vm386_vm0, %v330_v0  ;;  %2006 = vset.pattern.permute.xlu0 %v2202_v1  ;;  %v344_v4 = vld [vmem:[%s2689_s6 + $0x30] sm:$0xff]  ;;  %v342_v5 = vld [vmem:[%s2689_s6 + $0x20] sm:$0xff]  ;;  %v341_v8 = vld [vmem:[%s2689_s6 + $0x18] sm:$0xff]  ;;  %vm411_vm3 = vcmask 1043456   ;;  %vm633_vm4 = vcmask 523264   ;;  %vm861_vm5 = vcmask 1041408  }
  0x15   : > { %2007 = vset.pattern.permute.xlu1 %v2202_v1  ;;  %383 = vperm.xlu0 %2006, %v345_v2   ;;  %s1636_s24 = sshll.u32 %s2305_s19, 2  ;;  %v340_v9 = vld [vmem:[%s2689_s6 + $0x10] sm:$0xff]  ;;  %v339_v10 = vld [vmem:[%s2689_s6 + $0x8] sm:$0xff]  ;;  %v338_v11 = vld [vmem:[%s2689_s6] sm:$0xff]  ;;  %v320_v15 = vshrl.u32 %v319_v12, 7  ;;  %s1637_s25 = sshll.u32 %s2305_s19, 1 }
  0x16   : > { %373 = vperm.xlu1 %2007, %v343_v3   ;;  %s313_s13 = scalar_lea.vmem %s2683_s0, %s1636_s24  ;;  %v1663_v13 = vld [vmem:[%s2689_s6 + $0x78] sm:$0xff]  ;;  %v1662_v14 = vld [vmem:[%s2689_s6 + $0x70] sm:$0xff]  ;;  %v1661_v16 = vld [vmem:[%s2689_s6 + $0x68] sm:$0xff]  ;;  %s317_s10 = scalar_lea.vmem %s2684_s1, %s1637_s25  ;;  %vm836_vm6 = vcmask 15360   ;;  %vm2204_vm7 = vmmov 0   ;;  %vm1543_vm8 = vcmask 1040384  }
  0x17   : > { %v318_v6 = vld [vmem:[%s313_s13] sm:$0xf]  ;;  %vm322_vm1 = vcmp.eq.s32.totalorder %v320_v15, 1  ;;  %vm321_vm2 = vcmp.eq.s32.totalorder %v320_v15, 0  ;;  %v1659_v21 = vld [vmem:[%s2689_s6 + $0x58] sm:$0xff]  ;;  %v1658_v23 = vld [vmem:[%s2689_s6 + $0x50] sm:$0xff] }
  0x18   : > { %v324_v7 = vmul.f32 0.01, %v318_v6  ;;  %v1638_v17 = vadd.f32 -1.0, %v318_v6  ;;  %v1660_v18 = vld [vmem:[%s2689_s6 + $0x60] sm:$0xff]  ;;  %v331_v25 = vld [vmem:[%s2685_s2 + $0x8] sm:$0xff]  ;;  %v332_v26 = vld [vmem:[%s2685_s2 + $0x10] sm:$0xff] }
  0x19   : > { %378 = vperm.xlu0 %2006, %v344_v4   ;;  %v1657_v27 = vld [vmem:[%s2689_s6 + $0x48] sm:$0xff]  ;;  %v1656_v28 = vld [vmem:[%s2689_s6 + $0x40] sm:$0xff]  ;;  %v333_v29 = vld [vmem:[%s2685_s2 + $0x18] sm:$0xff]  ;;  %s2144_s9 = sshll.u32 %s2205_s23, 4  ;;  %s2145_s9 = int_to_ptr.vmem [resolvable:$false] %s2144_s9 }
  0x1a   : > { %368 = vperm.xlu1 %2007, %v342_v5   ;;  %2008 = vlog2.f32 %v324_v7  ;;  %v334_v30 = vld [vmem:[%s2685_s2 + $0x20] sm:$0xff]  ;;  %v1712_v31 = vld [vmem:[%s2689_s6 + $0xb8] sm:$0xff]  ;;  %v1711_v32 = vld [vmem:[%s2689_s6 + $0xb0] sm:$0xff]  ;;  %s2146_s25 = scalar_lea.vmem %s2145_s9, 64 }
  0x1b   : > { %v335_v33 = vld [vmem:[%s2685_s2 + $0x28] sm:$0xff]  ;;  %v336_v34 = vld [vmem:[%s2685_s2 + $0x30] sm:$0xff]  ;;  %v1709_v36 = vld [vmem:[%s2689_s6 + $0xa0] sm:$0xff] }
  0x1c   : > { %v1710_v35 = vld [vmem:[%s2689_s6 + $0xa8] sm:$0xff]  ;;  %v337_v37 = vld [vmem:[%s2685_s2 + $0x38] sm:$0xff]  ;;  %v1707_v39 = vld [vmem:[%s2689_s6 + $0x90] sm:$0xff] }
  0x1d   : > { %363 = vperm.xlu0 %2006, %v341_v8   ;;  %v1708_v38 = vld [vmem:[%s2689_s6 + $0x98] sm:$0xff]  ;;  %v1706_v40 = vld [vmem:[%s2689_s6 + $0x88] sm:$0xff]  ;;  %v1705_v41 = vld [vmem:[%s2689_s6 + $0x80] sm:$0xff] }
  0x1e   : > { %358 = vperm.xlu1 %2007, %v340_v9   ;;  %v1736_v42 = vld [vmem:[%s2689_s6 + $0xf8] sm:$0xff]  ;;  %v1735_v43 = vld [vmem:[%s2689_s6 + $0xf0] sm:$0xff]  ;;  %v1734_v44 = vld [vmem:[%s2689_s6 + $0xe8] sm:$0xff] }
  0x1f   : > { %v1733_v45 = vld [vmem:[%s2689_s6 + $0xe0] sm:$0xff]  ;;  %v1732_v46 = vld [vmem:[%s2689_s6 + $0xd8] sm:$0xff]  ;;  %v1731_v47 = vld [vmem:[%s2689_s6 + $0xd0] sm:$0xff] }
  0x20   : > { %v1730_v48 = vld [vmem:[%s2689_s6 + $0xc8] sm:$0xff]  ;;  %v1729_v49 = vld [vmem:[%s2689_s6 + $0xc0] sm:$0xff] }
  0x21   : > { %353 = vperm.xlu0 %2006, %v339_v10   ;;  %v1456_v50 = vld [vmem:[%s2690_s7] sm:$0x3] }
  0x22   : > { %348 = vperm.xlu1 %2007, %v338_v11   ;;  %v576_v51 = vld [vmem:[%s2687_s4] sm:$0xff] }
  0x23   : > { %1863 = vmatprep.mubr.msk.f32.mxu1 %vm633_vm4, %v576_v51 }
  0x25   : > { %630 = vperm.xlu0 %2006, %v1663_v13  }
  0x26   : > { %625 = vperm.xlu1 %2007, %v1662_v14  }
  0x27   : > { %v2009_v19 = vpop.eup %2008 }
  0x28   : > { %v326_v20 = vmul.f32 0.6931472, %v2009_v19 }
  0x29   : > { %620 = vperm.xlu0 %2006, %v1661_v16  }
  0x2a   : > { %615 = vperm.xlu1 %2007, %v1660_v18   ;;  %v327_v22 = vsel %vm322_vm1, %v1638_v17, %v326_v20 }
  0x2b   : > { %v328_v24 = vsel %vm321_vm2, %v318_v6, %v327_v22 }
  0x2c   : > { %1833 = vmatprep.subr.msk.mxu0 %vm411_vm3, %v328_v24 }
  0x2d   : > { %610 = vperm.xlu0 %2006, %v1659_v21   ;;  %1834 = vmatpush3.msk.msra.mxu0 %vm411_vm3, %v328_v24 }
  0x2e   : > { %605 = vperm.xlu1 %2007, %v1658_v23   ;;  %1836 = vmatmul.mubr.msk.f32.vlgmr.msra.gmra.mxu0 %vm386_vm0, %v331_v25 }
  0x2f   : > { %1838 = vmatprep.mubr.msk.f32.mxu0 %vm386_vm0, %v332_v26 }
  0x31   : > { %600 = vperm.xlu0 %2006, %v1657_v27  }
  0x32   : > { %595 = vperm.xlu1 %2007, %v1656_v28   ;;  %1839 = vmatmul.mubr.msk.f32.gmra.mxu0 %vm386_vm0, %v333_v29 }
  0x33   : > { %1841 = vmatprep.mubr.msk.f32.mxu0 %vm386_vm0, %v334_v30 }
  0x35   : > { %1145 = vperm.xlu0 %2006, %v1712_v31  }
  0x36   : > { %1140 = vperm.xlu1 %2007, %v1711_v32   ;;  %1842 = vmatmul.mubr.msk.f32.gmra.mxu0 %vm386_vm0, %v335_v33 }
  0x37   : > { %1844 = vmatprep.mubr.msk.f32.mxu0 %vm386_vm0, %v336_v34 }
  0x39   : > { %1135 = vperm.xlu0 %2006, %v1710_v35  }
  0x3a   : > { %1130 = vperm.xlu1 %2007, %v1709_v36   ;;  %1845 = vmatmul.mubr.msk.f32.gmra.mxu0 %vm386_vm0, %v337_v37 }
  0x3d   : > { %1125 = vperm.xlu0 %2006, %v1708_v38  }
  0x3e   : > { %1120 = vperm.xlu1 %2007, %v1707_v39  }
  0x41   : > { %1115 = vperm.xlu0 %2006, %v1706_v40  }
  0x42   : > { %1110 = vperm.xlu1 %2007, %v1705_v41  }
  0x45   : > { %1267 = vperm.xlu0 %2006, %v1736_v42  }
  0x46   : > { %1262 = vperm.xlu1 %2007, %v1735_v43  }
  0x49   : > { %1257 = vperm.xlu0 %2006, %v1734_v44  }
  0x4a   : > { %1252 = vperm.xlu1 %2007, %v1733_v45  }
  0x4d   : > { %1247 = vperm.xlu0 %2006, %v1732_v46  }
  0x4e   : > { %1242 = vperm.xlu1 %2007, %v1731_v47  }
  0x51   : > { %1237 = vperm.xlu0 %2006, %v1730_v48  }
  0x52   : > { %1232 = vperm.xlu1 %2007, %v1729_v49  }
  0x55   : > { %1459 = vperm.xlu0 %2006, %v1456_v50  }
  0x90   : > { %v384_v52 = vpop.permute.xlu0 %383 }
  0x91   : > { %v374_v53 = vpop.permute.xlu1 %373 }
  0x94   : > { %v379_v55 = vpop.permute.xlu0 %378 }
  0x95   : > { %v369_v57 = vpop.permute.xlu1 %368 }
  0x98   : > { %v364_v60 = vpop.permute.xlu0 %363 }
  0x99   : > { %v359_v63 = vpop.permute.xlu1 %358 }
  0x9c   : > { %v354_v8 = vpop.permute.xlu0 %353 }
  0x9d   : > { %v349_v14 = vpop.permute.xlu1 %348 }
  0xee   : > { %v1837_v54 = vpop.f32.mrf.mxu0 }
  0xef   : > { %v2447_v11 = vadd.f32 %v1837_v54, %v354_v8  ;;  %v579_v54 = vld [vmem:[%s2687_s4 + $0x18] sm:$0xff] }
  0xf0   : > { %v481_v56 = vpop.f32.mrf.mxu0 }
  0xf1   : > { %v482_v15 = vadd.f32 %v481_v56, %v349_v14  ;;  %v1649_v18 = vmul.f32 -1.442695, %v2447_v11  ;;  %v581_v56 = vld [vmem:[%s2687_s4 + $0x28] sm:$0xff] }
  0xf2   : > { %v1840_v58 = vpop.f32.mrf.mxu0 }
  0xf3   : > { %v2442_v0 = vadd.f32 %v1840_v58, %v364_v60  ;;  %v1648_v19 = vmul.f32 -1.442695, %v482_v15  ;;  %v583_v58 = vld [vmem:[%s2687_s4 + $0x38] sm:$0xff]  ;;  %v828_v60 = vld [vmem:[%s2686_s3] sm:$0xff] }
  0xf4   : > { %v491_v59 = vpop.f32.mrf.mxu0  ;;  %1877 = vmatprep.mubr.msk.f32.mxu0 %vm836_vm6, %v828_v60 }
  0xf5   : > { %v2444_v5 = vadd.f32 %v491_v59, %v359_v63  ;;  %v1651_v9 = vmul.f32 -1.442695, %v2442_v0  ;;  %v329_v59 = vld [vmem:[%s317_s10] sm:$0x3]  ;;  %v830_v63 = vld [vmem:[%s2686_s3 + $0x10] sm:$0xff]  ;;  %s1635_s10 = sshll.u32 %s307_s26, 1 }
  0xf6   : > { %v1843_v61 = vpop.f32.mrf.mxu0  ;;  %1875 = vmatprep.subr.msk.mxu0 %vm861_vm5, %v329_v59  ;;  %s309_s13 = scalar_lea.vmem [#allocation2], %s1635_s10 }
  0xf7   : > { %v507_v62 = vadd.f32 %v1843_v61, %v374_v53  ;;  %v1650_v16 = vmul.f32 -1.442695, %v2444_v5  ;;  %v578_v53 = vld [vmem:[%s2687_s4 + $0x10] sm:$0xff]  ;;  %1876 = vmatpush3.msk.msra.mxu0 %vm861_vm5, %v329_v59  ;;  %v829_v61 = vld [vmem:[%s2686_s3 + $0x8] sm:$0xff]  ;;  %s1560_s17 = sshll.u32 %s309_s13, 4  ;;  %s1561_s17 = int_to_ptr.vmem [resolvable:$true] %s1560_s17 }
  0xf8   : > { %v501_v1 = vpop.f32.mrf.mxu0  ;;  %1878 = vmatmul.mubr.msk.f32.vlgmr.msra.gmra.mxu0 %vm836_vm6, %v829_v61  ;;  %s2140_s22 = scalar_lea.vmem %s1561_s17, 32  ;;  %p2147_p0 = scmp.lt.s32.totalorder %s1561_s17, %s2145_s9 }
  0xf9   : > { %v1653_v2 = vmul.f32 -1.442695, %v507_v62  ;;  %v502_v3 = vadd.f32 %v501_v1, %v369_v57  ;;  %v582_v57 = vld [vmem:[%s2687_s4 + $0x30] sm:$0xff]  ;;  %1880 = vmatprep.mubr.msk.f32.mxu0 %vm836_vm6, %v830_v63  ;;  %v832_v1 = vld [vmem:[%s2686_s3 + $0x20] sm:$0xff]  ;;  %p2141_p11 = scmp.ne.s32.totalorder %s1561_s17, %s2140_s22  ;;  %p2148_p1 = scmp.lt.s32.totalorder %s2146_s25, %s2140_s22 }
  0xfa   : > { %v1846_v4 = vpop.f32.mrf.mxu0 }
  0xfb   : > { %v1652_v6 = vmul.f32 -1.442695, %v502_v3  ;;  %v517_v7 = vadd.f32 %v1846_v4, %v384_v52  ;;  %2010 = vpow2.f32 %v1653_v2  ;;  %v577_v52 = vld [vmem:[%s2687_s4 + $0x8] sm:$0xff]  ;;  %v835_v4 = vld [vmem:[%s2686_s3 + $0x38] sm:$0xff]  ;;  %p2142_p12 = pnand %p2141_p11, %p2289_p5  ;;  %p2149_p2 = por %p2148_p1, %p2147_p0 }
  0xfc   : > { %v511_v10 = vpop.f32.mrf.mxu0  ;;  %v833_v2 = vld [vmem:[%s2686_s3 + $0x28] sm:$0xff] }
  0xfd   : > { %v1655_v12 = vmul.f32 -1.442695, %v517_v7  ;;  %v512_v13 = vadd.f32 %v511_v10, %v379_v55  ;;  %2012 = vpow2.f32 %v1652_v6  ;;  %v580_v55 = vld [vmem:[%s2687_s4 + $0x20] sm:$0xff]  ;;  %v626_v6 = vpop.permute.xlu1 %625  ;;  %p2143_p13 = pneg %p2142_p12 }
  0xff   : > { %2014 = vpow2.f32 %v1655_v12  ;;  %v1654_v17 = vmul.f32 -1.442695, %v512_v13  ;;  %p2150_p3 = pnand %p2149_p2, %p2143_p13 }
 0x100   : > { %2016 = vpow2.f32 %v1651_v9 }
 0x101   : > { %2018 = vpow2.f32 %v1654_v17  ;;  %v616_v10 = vpop.permute.xlu1 %615 }
 0x102   : > { %2020 = vpow2.f32 %v1650_v16 }
 0x103   : > { %2022 = vpow2.f32 %v1649_v18 }
 0x104   : > { %2024 = vpow2.f32 %v1648_v19 }
 0x105   : > { %v606_v16 = vpop.permute.xlu1 %605 }
 0x108   : > { %v2011_v20 = vpop.eup %2010 }
 0x109   : > { %v549_v23 = vadd.f32 1.0, %v2011_v20 }
 0x10a   : > { %v2013_v21 = vpop.eup %2012 }
 0x10b   : > { %v548_v27 = vadd.f32 1.0, %v2013_v21 }
 0x10c   : > { %v2015_v22 = vpop.eup %2014 }
 0x10d   : > { %v2017_v24 = vpop.eup %2016  ;;  %v551_v25 = vadd.f32 1.0, %v2015_v22 }
 0x10e   : > { %v2019_v26 = vpop.eup %2018  ;;  %v547_v30 = vadd.f32 1.0, %v2017_v24 }
 0x10f   : > { %2026 = vrcp.f32 %v551_v25  ;;  %v550_v28 = vadd.f32 1.0, %v2019_v26  ;;  %v2021_v29 = vpop.eup %2020 }
 0x110   : > { %2028 = vrcp.f32 %v549_v23  ;;  %v2023_v31 = vpop.eup %2022  ;;  %v546_v32 = vadd.f32 1.0, %v2021_v29 }
 0x111   : > { %2030 = vrcp.f32 %v550_v28  ;;  %v2025_v33 = vpop.eup %2024  ;;  %v545_v34 = vadd.f32 1.0, %v2023_v31  ;;  %v596_v31 = vpop.permute.xlu1 %595 }
 0x112   : > { %2032 = vrcp.f32 %v548_v27  ;;  %v544_v35 = vadd.f32 1.0, %v2025_v33 }
 0x113   : > { %2034 = vrcp.f32 %v547_v30 }
 0x114   : > { %2036 = vrcp.f32 %v546_v32 }
 0x115   : > { %2038 = vrcp.f32 %v545_v34 }
 0x116   : > { %2040 = vrcp.f32 %v544_v35 }
 0x11c   : > { %v2027_v36 = vpop.eup %2026 }
 0x11d   : > { %v2029_v37 = vpop.eup %2028  ;;  %v575_v38 = vmul.f32 %v2027_v36, %v517_v7 }
 0x11e   : > { %v2031_v39 = vpop.eup %2030  ;;  %v573_v42 = vmul.f32 %v2029_v37, %v507_v62  ;;  %v1680_v62 = vld [vmem:[%s2687_s4 + $0x40] sm:$0xff] }
 0x11f   : > { %v574_v40 = vmul.f32 %v2031_v39, %v512_v13  ;;  %1847 = vmatprep.subr.mxu1 %v575_v38  ;;  %v2033_v41 = vpop.eup %2032 }
 0x120   : > { %1848 = vmatpush3.msra.mxu1 %v575_v38  ;;  %v2035_v43 = vpop.eup %2034  ;;  %v572_v44 = vmul.f32 %v2033_v41, %v502_v3  ;;  %v834_v3 = vld [vmem:[%s2686_s3 + $0x30] sm:$0xff] }
 0x121   : > { %1849 = vmatprep.subr.mxu1 %v574_v40  ;;  %v2037_v45 = vpop.eup %2036  ;;  %v571_v46 = vmul.f32 %v2035_v43, %v2442_v0  ;;  %v831_v0 = vld [vmem:[%s2686_s3 + $0x18] sm:$0xff] }
 0x122   : > { %1850 = vmatpush3.msra.mxu1 %v574_v40  ;;  %v2039_v47 = vpop.eup %2038  ;;  %v570_v48 = vmul.f32 %v2037_v45, %v2444_v5  ;;  %1881 = vmatmul.mubr.msk.f32.gmra.mxu0 %vm836_vm6, %v831_v0  ;;  %v631_v5 = vpop.permute.xlu0 %630 }
 0x123   : > { %1851 = vmatprep.subr.mxu1 %v573_v42  ;;  %v2041_v49 = vpop.eup %2040  ;;  %v569_v50 = vmul.f32 %v2039_v47, %v2447_v11  ;;  %1883 = vmatprep.mubr.msk.f32.mxu0 %vm836_vm6, %v832_v1 }
 0x124   : > { %1852 = vmatpush3.msra.mxu1 %v573_v42  ;;  %v568_v51 = vmul.f32 %v2041_v49, %v482_v15 }
 0x125   : > { %1853 = vmatprep.subr.mxu1 %v572_v44 }
 0x126   : > { %1854 = vmatpush3.msra.mxu1 %v572_v44  ;;  %1884 = vmatmul.mubr.msk.f32.gmra.mxu0 %vm836_vm6, %v833_v2  ;;  %v621_v8 = vpop.permute.xlu0 %620 }
 0x127   : > { %1855 = vmatprep.subr.mxu1 %v571_v46  ;;  %1886 = vmatprep.mubr.msk.f32.mxu0 %vm836_vm6, %v834_v3 }
 0x128   : > { %1856 = vmatpush3.msra.mxu1 %v571_v46 }
 0x129   : > { %1857 = vmatprep.subr.mxu1 %v570_v48 }
 0x12a   : > { %1858 = vmatpush3.msra.mxu1 %v570_v48  ;;  %1887 = vmatmul.mubr.msk.f32.gmra.mxu0 %vm836_vm6, %v835_v4  ;;  %v611_v13 = vpop.permute.xlu0 %610 }
 0x12b   : > { %1859 = vmatprep.subr.mxu1 %v569_v50 }
 0x12c   : > { %1860 = vmatpush3.msra.mxu1 %v569_v50 }
 0x12d   : > { %1861 = vmatprep.subr.mxu1 %v568_v51 }
 0x12e   : > { %1862 = vmatpush3.msra.mxu1 %v568_v51  ;;  %v601_v25 = vpop.permute.xlu0 %600 }
 0x12f   : > { %1864 = vmatmul.mubr.msk.f32.vlgmr.msra.gmra.mxu1 %vm633_vm4, %v577_v52 }
 0x130   : > { %1866 = vmatprep.mubr.msk.f32.mxu1 %vm633_vm4, %v578_v53 }
 0x133   : > { %1867 = vmatmul.mubr.msk.f32.gmra.mxu1 %vm633_vm4, %v579_v54 }
 0x134   : > { %1869 = vmatprep.mubr.msk.f32.mxu1 %vm633_vm4, %v580_v55 }
 0x137   : > { %1870 = vmatmul.mubr.msk.f32.gmra.mxu1 %vm633_vm4, %v581_v56 }
 0x138   : > { %1872 = vmatprep.mubr.msk.f32.mxu1 %vm633_vm4, %v582_v57 }
 0x13b   : > { %1873 = vmatmul.mubr.msk.f32.gmra.mxu1 %vm633_vm4, %v583_v58 }
 0x13c   : > { %1905 = vmatprep.mubr.msk.f32.mxu1 %vm633_vm4, %v1680_v62 }
 0x1ef   : > { %v1865_v7 = vpop.f32.mrf.mxu1 }
 0x1f0   : > { %v2527_v28 = vadd.f32 %v1865_v7, %v601_v25  ;;  %v1683_v7 = vld [vmem:[%s2687_s4 + $0x58] sm:$0xff] }
 0x1f1   : > { %v724_v9 = vpop.f32.mrf.mxu1 }
 0x1f2   : > { %v725_v32 = vadd.f32 %v724_v9, %v596_v31  ;;  %v1673_v35 = vmul.f32 -1.442695, %v2527_v28  ;;  %v1685_v9 = vld [vmem:[%s2687_s4 + $0x68] sm:$0xff] }
 0x1f3   : > { %v1868_v11 = vpop.f32.mrf.mxu1 }
 0x1f4   : > { %v2522_v17 = vadd.f32 %v1868_v11, %v611_v13  ;;  %v1672_v36 = vmul.f32 -1.442695, %v725_v32  ;;  %v1687_v11 = vld [vmem:[%s2687_s4 + $0x78] sm:$0xff]  ;;  %v1879_v13 = vpop.f32.mrf.mxu0 }
 0x1f5   : > { %v734_v12 = vpop.f32.mrf.mxu1 }
 0x1f6   : > { %v2524_v22 = vadd.f32 %v734_v12, %v606_v16  ;;  %v1675_v26 = vmul.f32 -1.442695, %v2522_v17  ;;  %v1721_v12 = vld [vmem:[%s2687_s4 + $0x80] sm:$0xff]  ;;  %v1146_v16 = vpop.permute.xlu0 %1145 }
 0x1f7   : > { %v1871_v14 = vpop.f32.mrf.mxu1  ;;  %1933 = vmatprep.mubr.msk.f32.mxu0 %vm633_vm4, %v1721_v12 }
 0x1f8   : > { %v750_v15 = vadd.f32 %v1871_v14, %v621_v8  ;;  %v1674_v33 = vmul.f32 -1.442695, %v2524_v22  ;;  %v1684_v8 = vld [vmem:[%s2687_s4 + $0x60] sm:$0xff]  ;;  %v931_v14 = vpop.f32.mrf.mxu0 }
 0x1f9   : > { %v744_v18 = vpop.f32.mrf.mxu1 }
 0x1fa   : > { %v1677_v19 = vmul.f32 -1.442695, %v750_v15  ;;  %v745_v20 = vadd.f32 %v744_v18, %v616_v10  ;;  %v1686_v10 = vld [vmem:[%s2687_s4 + $0x70] sm:$0xff]  ;;  %v1141_v18 = vpop.permute.xlu1 %1140 }
 0x1fb   : > { %v1874_v21 = vpop.f32.mrf.mxu1 }
 0x1fc   : > { %v1676_v23 = vmul.f32 -1.442695, %v745_v20  ;;  %v760_v24 = vadd.f32 %v1874_v21, %v631_v5  ;;  %2042 = vpow2.f32 %v1677_v19  ;;  %v1681_v5 = vld [vmem:[%s2687_s4 + $0x48] sm:$0xff] }
 0x1fd   : > { %v754_v27 = vpop.f32.mrf.mxu1 }
 0x1fe   : > { %v1679_v29 = vmul.f32 -1.442695, %v760_v24  ;;  %v755_v30 = vadd.f32 %v754_v27, %v626_v6  ;;  %2044 = vpow2.f32 %v1676_v23  ;;  %v1682_v6 = vld [vmem:[%s2687_s4 + $0x50] sm:$0xff] }
 0x200   : > { %2046 = vpow2.f32 %v1679_v29  ;;  %v1678_v34 = vmul.f32 -1.442695, %v755_v30 }
 0x201   : > { %2048 = vpow2.f32 %v1675_v26 }
 0x202   : > { %2050 = vpow2.f32 %v1678_v34 }
 0x203   : > { %2052 = vpow2.f32 %v1674_v33 }
 0x204   : > { %2054 = vpow2.f32 %v1673_v35 }
 0x205   : > { %2056 = vpow2.f32 %v1672_v36 }
 0x209   : > { %v2043_v37 = vpop.eup %2042 }
 0x20a   : > { %v792_v40 = vadd.f32 1.0, %v2043_v37 }
 0x20b   : > { %v2045_v38 = vpop.eup %2044 }
 0x20c   : > { %v791_v44 = vadd.f32 1.0, %v2045_v38 }
 0x20d   : > { %v2047_v39 = vpop.eup %2046 }
 0x20e   : > { %v2049_v41 = vpop.eup %2048  ;;  %v794_v42 = vadd.f32 1.0, %v2047_v39 }
 0x20f   : > { %v2051_v43 = vpop.eup %2050  ;;  %v790_v47 = vadd.f32 1.0, %v2049_v41 }
 0x210   : > { %2058 = vrcp.f32 %v794_v42  ;;  %v793_v45 = vadd.f32 1.0, %v2051_v43  ;;  %v2053_v46 = vpop.eup %2052 }
 0x211   : > { %2060 = vrcp.f32 %v792_v40  ;;  %v2055_v48 = vpop.eup %2054  ;;  %v789_v49 = vadd.f32 1.0, %v2053_v46 }
 0x212   : > { %2062 = vrcp.f32 %v793_v45  ;;  %v2057_v50 = vpop.eup %2056  ;;  %v788_v51 = vadd.f32 1.0, %v2055_v48 }
 0x213   : > { %2064 = vrcp.f32 %v791_v44  ;;  %v787_v52 = vadd.f32 1.0, %v2057_v50 }
 0x214   : > { %2066 = vrcp.f32 %v790_v47 }
 0x215   : > { %2068 = vrcp.f32 %v789_v49 }
 0x216   : > { %2070 = vrcp.f32 %v788_v51 }
 0x217   : > { %2072 = vrcp.f32 %v787_v52 }
 0x21d   : > { %v2059_v53 = vpop.eup %2058 }
 0x21e   : > { %v2061_v54 = vpop.eup %2060  ;;  %v818_v55 = vmul.f32 %v2059_v53, %v760_v24  ;;  %v1131_v24 = vpop.permute.xlu1 %1130 }
 0x21f   : > { %v2063_v56 = vpop.eup %2062  ;;  %v816_v59 = vmul.f32 %v2061_v54, %v750_v15  ;;  %v1882_v15 = vpop.f32.mrf.mxu0 }
 0x220   : > { %v817_v57 = vmul.f32 %v2063_v56, %v755_v30  ;;  %1889 = vmatprep.subr.mxu1 %v818_v55  ;;  %v2065_v58 = vpop.eup %2064 }
 0x221   : > { %1890 = vmatpush3.msra.mxu1 %v818_v55  ;;  %v2067_v60 = vpop.eup %2066  ;;  %v815_v61 = vmul.f32 %v2065_v58, %v745_v20 }
 0x222   : > { %1891 = vmatprep.subr.mxu1 %v817_v57  ;;  %v2069_v62 = vpop.eup %2068  ;;  %v814_v63 = vmul.f32 %v2067_v60, %v2522_v17  ;;  %v941_v17 = vpop.f32.mrf.mxu0 }
 0x223   : > { %1892 = vmatpush3.msra.mxu1 %v817_v57  ;;  %v2071_v0 = vpop.eup %2070  ;;  %v813_v1 = vmul.f32 %v2069_v62, %v2524_v22  ;;  %v1136_v22 = vpop.permute.xlu0 %1135 }
 0x224   : > { %1893 = vmatprep.subr.mxu1 %v816_v59  ;;  %v2073_v2 = vpop.eup %2072  ;;  %v812_v3 = vmul.f32 %v2071_v0, %v2527_v28  ;;  %v1885_v21 = vpop.f32.mrf.mxu0 }
 0x225   : > { %1894 = vmatpush3.msra.mxu1 %v816_v59  ;;  %v811_v4 = vmul.f32 %v2073_v2, %v725_v32  ;;  %v1121_v36 = vpop.permute.xlu1 %1120 }
 0x226   : > { %1895 = vmatprep.subr.mxu1 %v815_v61  ;;  %v951_v26 = vpop.f32.mrf.mxu0 }
 0x227   : > { %1896 = vmatpush3.msra.mxu1 %v815_v61  ;;  %v1126_v29 = vpop.permute.xlu0 %1125 }
 0x228   : > { %1897 = vmatprep.subr.mxu1 %v814_v63  ;;  %v1888_v31 = vpop.f32.mrf.mxu0 }
 0x229   : > { %1898 = vmatpush3.msra.mxu1 %v814_v63  ;;  %v1111_v55 = vpop.permute.xlu1 %1110 }
 0x22a   : > { %1899 = vmatprep.subr.mxu1 %v813_v1  ;;  %v961_v44 = vpop.f32.mrf.mxu0 }
 0x22b   : > { %1900 = vmatpush3.msra.mxu1 %v813_v1  ;;  %v1116_v50 = vpop.permute.xlu0 %1115 }
 0x22c   : > { %1901 = vmatprep.subr.mxu1 %v812_v3 }
 0x22d   : > { %1902 = vmatpush3.msra.mxu1 %v812_v3 }
 0x22e   : > { %1903 = vmatprep.subr.mxu1 %v811_v4 }
 0x22f   : > { %1904 = vmatpush3.msra.mxu1 %v811_v4 }
 0x230   : > { %1906 = vmatmul.mubr.msk.f32.vlgmr.msra.gmra.mxu1 %vm633_vm4, %v1681_v5 }
 0x231   : > { %1908 = vmatprep.mubr.msk.f32.mxu1 %vm633_vm4, %v1682_v6 }
 0x234   : > { %1909 = vmatmul.mubr.msk.f32.gmra.mxu1 %vm633_vm4, %v1683_v7 }
 0x235   : > { %1911 = vmatprep.mubr.msk.f32.mxu1 %vm633_vm4, %v1684_v8 }
 0x238   : > { %1912 = vmatmul.mubr.msk.f32.gmra.mxu1 %vm633_vm4, %v1685_v9 }
 0x239   : > { %1914 = vmatprep.mubr.msk.f32.mxu1 %vm633_vm4, %v1686_v10 }
 0x23c   : > { %1915 = vmatmul.mubr.msk.f32.gmra.mxu1 %vm633_vm4, %v1687_v11 }
 0x2f0   : > { %v1907_v19 = vpop.f32.mrf.mxu1 }
 0x2f1   : > { %v1066_v39 = vadd.f32 %v1907_v19, %v1879_v13 }
 0x2f2   : > { %v1060_v20 = vpop.f32.mrf.mxu1 }
 0x2f3   : > { %v1061_v43 = vadd.f32 %v1060_v20, %v931_v14  ;;  %v2577_v52 = vadd.f32 %v1116_v50, %v1066_v39 }
 0x2f4   : > { %v1910_v23 = vpop.f32.mrf.mxu1 }
 0x2f5   : > { %v1076_v27 = vadd.f32 %v1910_v23, %v1882_v15  ;;  %v2579_v56 = vadd.f32 %v1111_v55, %v1061_v43  ;;  %v1714_v59 = vmul.f32 -1.442695, %v2577_v52 }
 0x2f6   : > { %v1070_v25 = vpop.f32.mrf.mxu1 }
 0x2f7   : > { %v1071_v33 = vadd.f32 %v1070_v25, %v941_v17  ;;  %v2568_v37 = vadd.f32 %v1126_v29, %v1076_v27  ;;  %v1713_v60 = vmul.f32 -1.442695, %v2579_v56  ;;  %v1722_v29 = vld [vmem:[%s2687_s4 + $0x88] sm:$0xff] }
 0x2f8   : > { %v1913_v28 = vpop.f32.mrf.mxu1 }
 0x2f9   : > { %v1086_v30 = vadd.f32 %v1913_v28, %v1885_v21  ;;  %v2573_v46 = vadd.f32 %v1121_v36, %v1071_v33  ;;  %v1716_v51 = vmul.f32 -1.442695, %v2568_v37  ;;  %v1726_v33 = vld [vmem:[%s2687_s4 + $0xa8] sm:$0xff]  ;;  %v2203_v36 = vmov 0.0  }
 0x2fa   : > { %v1080_v32 = vpop.f32.mrf.mxu1  ;;  %1945 = vmatprep.subr.mxu1 %v2203_v36  ;;  %1961 = vmatprep.mubr.msk.f32.mxu1 %vm2204_vm7, %v2203_v36 }
 0x2fb   : > { %v2566_v34 = vadd.f32 %v1136_v22, %v1086_v30  ;;  %v1081_v35 = vadd.f32 %v1080_v32, %v951_v26  ;;  %v1715_v57 = vmul.f32 -1.442695, %v2573_v46  ;;  %v1723_v30 = vld [vmem:[%s2687_s4 + $0x90] sm:$0xff]  ;;  %v1725_v32 = vld [vmem:[%s2687_s4 + $0xa0] sm:$0xff] }
 0x2fc   : > { %v1916_v38 = vpop.f32.mrf.mxu1 }
 0x2fd   : > { %v1718_v40 = vmul.f32 -1.442695, %v2566_v34  ;;  %v2571_v41 = vadd.f32 %v1131_v24, %v1081_v35  ;;  %v1096_v42 = vadd.f32 %v1916_v38, %v1888_v31  ;;  %v1724_v31 = vld [vmem:[%s2687_s4 + $0x98] sm:$0xff]  ;;  %v1263_v38 = vpop.permute.xlu1 %1262 }
 0x2fe   : > { %v1090_v45 = vpop.f32.mrf.mxu1  ;;  %v1728_v35 = vld [vmem:[%s2687_s4 + $0xb8] sm:$0xff] }
 0x2ff   : > { %v1717_v47 = vmul.f32 -1.442695, %v2571_v41  ;;  %v1155_v48 = vadd.f32 %v1146_v16, %v1096_v42  ;;  %v1091_v49 = vadd.f32 %v1090_v45, %v961_v44  ;;  %2074 = vpow2.f32 %v1718_v40 }
 0x301   : > { %v1720_v53 = vmul.f32 -1.442695, %v1155_v48  ;;  %v1154_v54 = vadd.f32 %v1141_v18, %v1091_v49  ;;  %2076 = vpow2.f32 %v1717_v47  ;;  %v1253_v42 = vpop.permute.xlu1 %1252 }
 0x303   : > { %2078 = vpow2.f32 %v1720_v53  ;;  %v1719_v58 = vmul.f32 -1.442695, %v1154_v54 }
 0x304   : > { %2080 = vpow2.f32 %v1716_v51 }
 0x305   : > { %2082 = vpow2.f32 %v1719_v58 }
 0x306   : > { %2084 = vpow2.f32 %v1715_v57 }
 0x307   : > { %2086 = vpow2.f32 %v1714_v59 }
 0x308   : > { %2088 = vpow2.f32 %v1713_v60 }
 0x30c   : > { %v2075_v61 = vpop.eup %2074 }
 0x30d   : > { %v1185_v0 = vadd.f32 1.0, %v2075_v61 }
 0x30e   : > { %v2077_v62 = vpop.eup %2076 }
 0x30f   : > { %v1184_v4 = vadd.f32 1.0, %v2077_v62 }
 0x310   : > { %v2079_v63 = vpop.eup %2078 }
 0x311   : > { %v2081_v1 = vpop.eup %2080  ;;  %v1187_v2 = vadd.f32 1.0, %v2079_v63 }
 0x312   : > { %v2083_v3 = vpop.eup %2082  ;;  %v1183_v7 = vadd.f32 1.0, %v2081_v1 }
 0x313   : > { %2090 = vrcp.f32 %v1187_v2  ;;  %v1186_v5 = vadd.f32 1.0, %v2083_v3  ;;  %v2085_v6 = vpop.eup %2084 }
 0x314   : > { %2092 = vrcp.f32 %v1185_v0  ;;  %v2087_v8 = vpop.eup %2086  ;;  %v1182_v9 = vadd.f32 1.0, %v2085_v6 }
 0x315   : > { %2094 = vrcp.f32 %v1186_v5  ;;  %v2089_v10 = vpop.eup %2088  ;;  %v1181_v11 = vadd.f32 1.0, %v2087_v8 }
 0x316   : > { %2096 = vrcp.f32 %v1184_v4  ;;  %v1180_v12 = vadd.f32 1.0, %v2089_v10 }
 0x317   : > { %2098 = vrcp.f32 %v1183_v7 }
 0x318   : > { %2100 = vrcp.f32 %v1182_v9 }
 0x319   : > { %2102 = vrcp.f32 %v1181_v11 }
 0x31a   : > { %2104 = vrcp.f32 %v1180_v12 }
 0x320   : > { %v2091_v13 = vpop.eup %2090 }
 0x321   : > { %v2093_v14 = vpop.eup %2092  ;;  %v1211_v15 = vmul.f32 %v2091_v13, %v1155_v48  ;;  %v1243_v48 = vpop.permute.xlu1 %1242 }
 0x322   : > { %v2095_v16 = vpop.eup %2094  ;;  %v1209_v19 = vmul.f32 %v2093_v14, %v2566_v34  ;;  %v1727_v34 = vld [vmem:[%s2687_s4 + $0xb0] sm:$0xff] }
 0x323   : > { %1917 = vmatprep.subr.mxu0 %v1211_v15  ;;  %v1210_v17 = vmul.f32 %v2095_v16, %v1154_v54  ;;  %v2097_v18 = vpop.eup %2096 }
 0x324   : > { %1918 = vmatpush3.msra.mxu0 %v1211_v15  ;;  %v2099_v20 = vpop.eup %2098  ;;  %v1208_v21 = vmul.f32 %v2097_v18, %v2571_v41 }
 0x325   : > { %1919 = vmatprep.subr.mxu0 %v1210_v17  ;;  %v2101_v22 = vpop.eup %2100  ;;  %v1207_v23 = vmul.f32 %v2099_v20, %v2568_v37  ;;  %v1268_v37 = vpop.permute.xlu0 %1267 }
 0x326   : > { %1920 = vmatpush3.msra.mxu0 %v1210_v17  ;;  %v2103_v24 = vpop.eup %2102  ;;  %v1206_v25 = vmul.f32 %v2101_v22, %v2573_v46  ;;  %v1233_v63 = vpop.permute.xlu1 %1232 }
 0x327   : > { %1921 = vmatprep.subr.mxu0 %v1209_v19  ;;  %v2105_v26 = vpop.eup %2104  ;;  %v1205_v27 = vmul.f32 %v2103_v24, %v2577_v52 }
 0x328   : > { %1922 = vmatpush3.msra.mxu0 %v1209_v19  ;;  %v1204_v28 = vmul.f32 %v2105_v26, %v2579_v56 }
 0x329   : > { %1923 = vmatprep.subr.mxu0 %v1208_v21  ;;  %v1258_v40 = vpop.permute.xlu0 %1257 }
 0x32a   : > { %1924 = vmatpush3.msra.mxu0 %v1208_v21 }
 0x32b   : > { %1925 = vmatprep.subr.mxu0 %v1207_v23 }
 0x32c   : > { %1926 = vmatpush3.msra.mxu0 %v1207_v23 }
 0x32d   : > { %1927 = vmatprep.subr.mxu0 %v1206_v25  ;;  %v1248_v45 = vpop.permute.xlu0 %1247 }
 0x32e   : > { %1928 = vmatpush3.msra.mxu0 %v1206_v25 }
 0x32f   : > { %1929 = vmatprep.subr.mxu0 %v1205_v27 }
 0x330   : > { %1930 = vmatpush3.msra.mxu0 %v1205_v27 }
 0x331   : > { %1931 = vmatprep.subr.mxu0 %v1204_v28  ;;  %v1238_v57 = vpop.permute.xlu0 %1237 }
 0x332   : > { %1932 = vmatpush3.msra.mxu0 %v1204_v28 }
 0x333   : > { %1934 = vmatmul.mubr.msk.f32.vlgmr.msra.gmra.mxu0 %vm633_vm4, %v1722_v29 }
 0x334   : > { %1936 = vmatprep.mubr.msk.f32.mxu0 %vm633_vm4, %v1723_v30 }
 0x337   : > { %1937 = vmatmul.mubr.msk.f32.gmra.mxu0 %vm633_vm4, %v1724_v31 }
 0x338   : > { %1939 = vmatprep.mubr.msk.f32.mxu0 %vm633_vm4, %v1725_v32 }
 0x33b   : > { %1940 = vmatmul.mubr.msk.f32.gmra.mxu0 %vm633_vm4, %v1726_v33 }
 0x33c   : > { %1942 = vmatprep.mubr.msk.f32.mxu0 %vm633_vm4, %v1727_v34 }
 0x33f   : > { %1943 = vmatmul.mubr.msk.f32.gmra.mxu0 %vm633_vm4, %v1728_v35 }
 0x3f3   : > { %v1935_v39 = vpop.f32.mrf.mxu0 }
 0x3f4   : > { %v2625_v60 = vadd.f32 %v1935_v39, %v1238_v57  ;;  %v1460_v39 = vpop.permute.xlu0 %1459 }
 0x3f5   : > { %v1360_v41 = vpop.f32.mrf.mxu0 }
 0x3f6   : > { %v1361_v0 = vadd.f32 %v1360_v41, %v1233_v63  ;;  %v1746_v3 = vmul.f32 -1.442695, %v2625_v60 }
 0x3f7   : > { %v1938_v43 = vpop.f32.mrf.mxu0 }
 0x3f8   : > { %v2620_v49 = vadd.f32 %v1938_v43, %v1248_v45  ;;  %v1745_v4 = vmul.f32 -1.442695, %v1361_v0 }
 0x3f9   : > { %v1370_v44 = vpop.f32.mrf.mxu0 }
 0x3fa   : > { %v2622_v54 = vadd.f32 %v1370_v44, %v1243_v48  ;;  %v1748_v58 = vmul.f32 -1.442695, %v2620_v49 }
 0x3fb   : > { %v1941_v46 = vpop.f32.mrf.mxu0 }
 0x3fc   : > { %v1386_v47 = vadd.f32 %v1941_v46, %v1258_v40  ;;  %v1747_v1 = vmul.f32 -1.442695, %v2622_v54 }
 0x3fd   : > { %v1380_v50 = vpop.f32.mrf.mxu0 }
 0x3fe   : > { %v1750_v51 = vmul.f32 -1.442695, %v1386_v47  ;;  %v1381_v52 = vadd.f32 %v1380_v50, %v1253_v42 }
 0x3ff   : > { %v1944_v53 = vpop.f32.mrf.mxu0 }
 0x400   : > { %v1749_v55 = vmul.f32 -1.442695, %v1381_v52  ;;  %v1396_v56 = vadd.f32 %v1944_v53, %v1268_v37  ;;  %2106 = vpow2.f32 %v1750_v51 }
 0x401   : > { %v1390_v59 = vpop.f32.mrf.mxu0 }
 0x402   : > { %v1752_v61 = vmul.f32 -1.442695, %v1396_v56  ;;  %v1391_v62 = vadd.f32 %v1390_v59, %v1263_v38  ;;  %2108 = vpow2.f32 %v1749_v55  ;;  %v1455_v38 = vld [vmem:[%s2688_s5] sm:$0x3] }
 0x404   : > { %2110 = vpow2.f32 %v1752_v61  ;;  %v1751_v2 = vmul.f32 -1.442695, %v1391_v62 }
 0x405   : > { %2112 = vpow2.f32 %v1748_v58 }
 0x406   : > { %2114 = vpow2.f32 %v1751_v2 }
 0x407   : > { %2116 = vpow2.f32 %v1747_v1 }
 0x408   : > { %2118 = vpow2.f32 %v1746_v3 }
 0x409   : > { %2120 = vpow2.f32 %v1745_v4 }
 0x40d   : > { %v2107_v5 = vpop.eup %2106 }
 0x40e   : > { %v1428_v8 = vadd.f32 1.0, %v2107_v5 }
 0x40f   : > { %v2109_v6 = vpop.eup %2108 }
 0x410   : > { %v1427_v12 = vadd.f32 1.0, %v2109_v6 }
 0x411   : > { %v2111_v7 = vpop.eup %2110 }
 0x412   : > { %v2113_v9 = vpop.eup %2112  ;;  %v1430_v10 = vadd.f32 1.0, %v2111_v7 }
 0x413   : > { %v2115_v11 = vpop.eup %2114  ;;  %v1426_v15 = vadd.f32 1.0, %v2113_v9 }
 0x414   : > { %2122 = vrcp.f32 %v1430_v10  ;;  %v1429_v13 = vadd.f32 1.0, %v2115_v11  ;;  %v2117_v14 = vpop.eup %2116 }
 0x415   : > { %2124 = vrcp.f32 %v1428_v8  ;;  %v2119_v16 = vpop.eup %2118  ;;  %v1425_v17 = vadd.f32 1.0, %v2117_v14 }
 0x416   : > { %2126 = vrcp.f32 %v1429_v13  ;;  %v2121_v18 = vpop.eup %2120  ;;  %v1424_v19 = vadd.f32 1.0, %v2119_v16 }
 0x417   : > { %2128 = vrcp.f32 %v1427_v12  ;;  %v1423_v20 = vadd.f32 1.0, %v2121_v18 }
 0x418   : > { %2130 = vrcp.f32 %v1426_v15 }
 0x419   : > { %2132 = vrcp.f32 %v1425_v17 }
 0x41a   : > { %2134 = vrcp.f32 %v1424_v19 }
 0x41b   : > { %2136 = vrcp.f32 %v1423_v20 }
 0x421   : > { %v2123_v21 = vpop.eup %2122 }
 0x422   : > { %v2125_v22 = vpop.eup %2124  ;;  %v1454_v23 = vmul.f32 %v2123_v21, %v1396_v56 }
 0x423   : > { %v2127_v24 = vpop.eup %2126  ;;  %v1452_v27 = vmul.f32 %v2125_v22, %v1386_v47 }
 0x424   : > { %v1453_v25 = vmul.f32 %v2127_v24, %v1391_v62  ;;  %1946 = vmatpush3.msra.mxu1 %v1454_v23  ;;  %v2129_v26 = vpop.eup %2128 }
 0x425   : > { %1947 = vmatprep.subr.mxu1 %v2203_v36  ;;  %v2131_v28 = vpop.eup %2130  ;;  %v1451_v29 = vmul.f32 %v2129_v26, %v1381_v52 }
 0x426   : > { %1948 = vmatpush3.msra.mxu1 %v1453_v25  ;;  %v2133_v30 = vpop.eup %2132  ;;  %v1450_v31 = vmul.f32 %v2131_v28, %v2620_v49 }
 0x427   : > { %1949 = vmatprep.subr.mxu1 %v2203_v36  ;;  %v2135_v32 = vpop.eup %2134  ;;  %v1449_v33 = vmul.f32 %v2133_v30, %v2622_v54 }
 0x428   : > { %1950 = vmatpush3.msra.mxu1 %v1452_v27  ;;  %v2137_v34 = vpop.eup %2136  ;;  %v1448_v35 = vmul.f32 %v2135_v32, %v2625_v60 }
 0x429   : > { %1951 = vmatprep.subr.mxu1 %v2203_v36  ;;  %v1447_v37 = vmul.f32 %v2137_v34, %v1361_v0 }
 0x42a   : > { %1952 = vmatpush3.msra.mxu1 %v1451_v29 }
 0x42b   : > { %1953 = vmatprep.subr.mxu1 %v2203_v36 }
 0x42c   : > { %1954 = vmatpush3.msra.mxu1 %v1450_v31 }
 0x42d   : > { %1955 = vmatprep.subr.mxu1 %v2203_v36 }
 0x42e   : > { %1956 = vmatpush3.msra.mxu1 %v1449_v33 }
 0x42f   : > { %1957 = vmatprep.subr.mxu1 %v2203_v36 }
 0x430   : > { %1958 = vmatpush3.msra.mxu1 %v1448_v35 }
 0x431   : > { %1959 = vmatprep.subr.mxu1 %v2203_v36 }
 0x432   : > { %1960 = vmatpush3.msra.mxu1 %v1447_v37 }
 0x433   : > { %1962 = vmatmul.mubr.msk.f32.vlgmr.msra.gmra.mxu1 %vm633_vm4, %v1455_v38 }
 0x4f3   : > { %v1531_v40 = vpop.f32.mrf.mxu1 }
 0x4f4   : > { %v1532_v41 = vadd.f32 %v1531_v40, %v1460_v39 }
 0x4f5   : > { %v1963_v42 = vpop.f32.mrf.mxu1 }
 0x4f6   : > { %2138 = vtanh.f32 %v1532_v41  ;;  %v1537_v43 = vmax.f32 %v1532_v41, 0.0 }
 0x4f8   : > { %v1538_v46 = vmin.f32 %v1537_v43, 5.0 }
 0x503   : > { %v2139_v44 = vpop.eup %2138 }
 0x504   : > { %v1536_v45 = vmul.f32 8.0, %v2139_v44 }
 0x506   : > { %v1540_v47 = vrot.slane %v1536_v45, 7 }
 0x508   : > { %v1542_v36 = vadd.f32 %v1540_v47, %v1538_v46 }
 0x50a   : > { %v1544_v48 = vsel %vm1543_vm8, %v1536_v45, %v1542_v36 }
 0x50b   : > { %1545 = vst [vmem:[%s309_s13] sm:$0x3] %v1544_v48 }
 0x50c   : > { %2153 = shalt.err (!%p2150_p3)
}
 0x50d   : > { %s2154_s24 = scalar_lea.hbm %s2648_s20, 32  ;;  %s2158_s12 = scalar_lea.hbm %s2691_s8, 64 }
 0x50e   : > { %p2155_p4 = scmp.ne.s32.totalorder %s2648_s20, %s2154_s24  ;;  %p2159_p9 = scmp.lt.s32.totalorder %s2648_s20, %s2691_s8 }
 0x50f   : > { %p2160_p10 = scmp.lt.s32.totalorder %s2158_s12, %s2154_s24 }
 0x510   : > { %p2156_p7 = pnand %p2155_p4, %p2289_p5 }
 0x511   : > { %p2161_p11 = por %p2160_p10, %p2159_p9 }
 0x512   : > { %p2157_p8 = pneg %p2156_p7 }
 0x514   : > { %p2162_p12 = pnand %p2161_p11, %p2157_p8 }
 0x516   : > { %2165 = shalt.err (!%p2162_p12)
}
 0x517   : > { %1964 = dma.vmem_to_hbm [thread:$0]  (%p2289_p5), %s1561_s17, 32, %s2648_s20, %s1547_s21  }
 0x518 PF: > { %p1970_p13 = scmp.ge.s32.totalorder %s2200_s30, 2  ;;  %s1572_s19 = sand.u32 1, %s2188_s27  }
 0x519   : > { %s1573_s22 = scalar_lea.sflag [#allocation3], %s1572_s19 }
 0x51a   : > { %p1967_p0 = pnand %p1970_p13, %p2293_p6 }
 0x51c   : > { %p1968_p1 = pneg %p1967_p0 }
 0x51e   : > { %2183 = dma.done.wait (%p1968_p1), %s1573_s22, 32  }
 0x51f   : > { %2185 = vsyncadd (%p1968_p1), %s1573_s22, 4294967264  ;;  %p18_p2 = scmp.ge.s32.totalorder %s2276_s11, 4   ;;  %s2694_s27 = smov %s2192_s28 }
 0x520   : > { %s2695_s28 = smov %s2196_s29  ;;  %s2696_s29 = smov %s2287_s14 }
 0x521   : > { %s2697_s30 = smov %s2276_s11  ;;  %20 = sbr.rel (!%p18_p2) target bundleno = 3 (0x3), region = 95 }
 0x526   :  { %1578 = vsyncpa [#allocation3], 1 }
 0x527   :  { %1580 = vsyncpa [#allocation3 + $0x1], 1 }

</bundles_post_ra>
